<compile_context>
chip_gen: v5e
topology: v5e:2x2
jax: 0.10.0
libtpu: 0.0.40
codegen_flags: <defaults>
</compile_context>

<pallas_src>
import functools

import jax
import jax.numpy as jnp
from jax import lax
from jax.experimental import pallas as pl
from jax.experimental.pallas import tpu as pltpu


def _round_up(x, m):
    return (x + m - 1) // m * m


def fusion_kernel(x_ref, w1_ref, b1_ref, w2_ref, b2_ref, mask_ref, o_ref, *, Wp):
    """conv3x3(pad=1) -> SimpleGate -> conv3x3(pad=1) for one batch element.

    Layout: channels on sublanes, flattened zero-padded spatial on lanes.

    x_ref   : (Cin, Lx)         flattened padded input, 2*halo zero halo each side
    w1_ref  : (9*Cin, Cin)      conv1 weights, rows ordered (kh, kw, co)
    b1_ref  : (Cin, 1)
    w2_ref  : (9*Cout, Cin//2)  conv2 weights, rows ordered (kh, kw, co)
    b2_ref  : (Cout, 1)
    mask_ref: (1, Ly)           1.0 on real (non-pad) pixels, 0.0 on the pad ring
    o_ref   : (Cout, Lg)        lane-dense output slab (Lg % 128 == 0)
    """
    Cin = x_ref.shape[0]
    Cout, Lg = o_ref.shape
    Chalf = Cin // 2
    halo = Wp + 1                          # max |flat shift| of a 3x3 tap
    Ly = Lg + 2 * halo                     # gated-activation slab width
    offs = [(kh - 1) * Wp + (kw - 1) for kh in range(3) for kw in range(3)]

    # ---- conv1: one MXU matmul, then 9 lane-shifted accumulations (VPU) ----
    x = x_ref[...]                                                  # (Cin, Lx)
    t1 = jnp.dot(w1_ref[...], x, preferred_element_type=jnp.float32)  # (9*Cin, Lx)
    acc1 = None
    for t, d in enumerate(offs):
        piece = t1[t * Cin:(t + 1) * Cin, halo + d: halo + d + Ly]
        acc1 = piece if acc1 is None else acc1 + piece
    y = acc1 + b1_ref[...]                                          # (Cin, Ly)

    # ---- SimpleGate; mask re-creates the zero padding conv2 expects ----
    g = (y[:Chalf, :] * y[Chalf:, :]) * mask_ref[...]               # (Chalf, Ly)

    # ---- conv2: one MXU matmul, then 9 lane-shifted accumulations ----
    t2 = jnp.dot(w2_ref[...], g, preferred_element_type=jnp.float32)  # (9*Cout, Ly)
    acc2 = None
    for t, d in enumerate(offs):
        piece = t2[t * Cout:(t + 1) * Cout, halo + d: halo + d + Lg]
        acc2 = piece if acc2 is None else acc2 + piece
    out = acc2 + b2_ref[...]                                        # (Cout, Lg)
    o_ref[...] = out.astype(o_ref.dtype)


def fusion_sub_block(x_nchw, w1_hwio, b1, w2_hwio, b2):
    """FusionSubBlock forward. x_nchw: (N, Cin, H, W) -> (N, Cout, H, W)."""
    N, Cin, H, W = x_nchw.shape
    Chalf = Cin // 2
    Cout = w2_hwio.shape[-1]
    Hp, Wp = H + 2, W + 2
    L = Hp * Wp                      # flattened zero-padded image length
    halo = Wp + 1
    Lg = _round_up(L, 128)           # lane-dense output slab
    Ly = Lg + 2 * halo               # gate slab (+halo each side)
    Lx = Lg + 4 * halo               # input slab (+2*halo each side)

    # Flatten the zero-padded image onto the lane axis, with halo + tail pad.
    x_pad = jnp.pad(x_nchw, ((0, 0), (0, 0), (1, 1), (1, 1)))
    x_flat = x_pad.reshape(N, Cin, L)
    x_arr = jnp.pad(x_flat, ((0, 0), (0, 0), (2 * halo, Lx - L - 2 * halo)))

    # Weights reordered so one matmul covers all taps: rows = (kh, kw, co).
    w1_rows = jnp.transpose(w1_hwio, (0, 1, 3, 2)).reshape(9 * Cin, Cin)
    w2_rows = jnp.transpose(w2_hwio, (0, 1, 3, 2)).reshape(9 * Cout, Chalf)
    b1c = b1.reshape(Cin, 1).astype(jnp.float32)
    b2c = b2.reshape(Cout, 1).astype(jnp.float32)

    # 1.0 on real pixels of the padded image, 0.0 on the pad ring / halo / tail.
    interior = jnp.pad(jnp.ones((H, W), jnp.float32), ((1, 1), (1, 1))).reshape(L)
    mask = jnp.pad(interior, (halo, Ly - L - halo)).reshape(1, Ly)

    kernel = functools.partial(fusion_kernel, Wp=Wp)

    out_flat = pl.pallas_call(
        kernel,
        out_shape=jax.ShapeDtypeStruct((N, Cout, Lg), x_nchw.dtype),
        grid_spec=pltpu.PrefetchScalarGridSpec(
            num_scalar_prefetch=0,
            grid=(N,),
            in_specs=[
                pl.BlockSpec((None, Cin, Lx), lambda n: (n, 0, 0)),
                pl.BlockSpec((9 * Cin, Cin), lambda n: (0, 0)),
                pl.BlockSpec((Cin, 1), lambda n: (0, 0)),
                pl.BlockSpec((9 * Cout, Chalf), lambda n: (0, 0)),
                pl.BlockSpec((Cout, 1), lambda n: (0, 0)),
                pl.BlockSpec((1, Ly), lambda n: (0, 0)),
            ],
            out_specs=pl.BlockSpec((None, Cout, Lg), lambda n: (n, 0, 0)),
        ),
        compiler_params=pltpu.CompilerParams(
            dimension_semantics=("parallel",)),
    )(x_arr, w1_rows, b1c, w2_rows, b2c, mask)

    # TODO(synk): for production H/W/C sizes, add a row-tiled grid axis with a
    # 1-row halo so per-step VMEM stays within v7x's 64 MiB and the pipeline
    # gets >=8 steps to overlap DMA with compute.
    out = out_flat[:, :, :L].reshape(N, Cout, Hp, Wp)[:, :, 1:H + 1, 1:W + 1]
    return out


def reference_forward(x_nchw, w1_hwio, b1, w2_hwio, b2):
    """Pure-JAX reference mirroring the PyTorch module (NCHW conv semantics)."""
    dn = ("NCHW", "OIHW", "NCHW")
    w1_oihw = jnp.transpose(w1_hwio, (3, 2, 0, 1))
    y = lax.conv_general_dilated(x_nchw, w1_oihw, (1, 1), "SAME",
                                 dimension_numbers=dn)
    y = y + b1[None, :, None, None]
    c = y.shape[1] // 2
    g = y[:, :c] * y[:, c:]
    w2_oihw = jnp.transpose(w2_hwio, (3, 2, 0, 1))
    out = lax.conv_general_dilated(g, w2_oihw, (1, 1), "SAME",
                                   dimension_numbers=dn)
    return out + b2[None, :, None, None]


if __name__ == "__main__":
    N, Cin, Cout, H, W = 2, 8, 4, 16, 16

    key = jax.random.PRNGKey(0)
    k1, k2, k3, k4, k5 = jax.random.split(key, 5)
    # Deterministic synthetic parameters (HWIO layout for the kernel).
    w1 = jax.random.normal(k1, (3, 3, Cin, Cin), jnp.float32) * 0.1
    b1 = jax.random.normal(k2, (Cin,), jnp.float32) * 0.1
    w2 = jax.random.normal(k3, (3, 3, Cin // 2, Cout), jnp.float32) * 0.1
    b2 = jax.random.normal(k4, (Cout,), jnp.float32) * 0.1
    x = jax.random.normal(k5, (N, Cin, H, W), jnp.float32)

    out = jax.block_until_ready(fusion_sub_block(x, w1, b1, w2, b2))
    ref = jax.block_until_ready(reference_forward(x, w1, b1, w2, b2))

    assert out.shape == (N, Cout, H, W), out.shape
    assert jnp.allclose(out, ref, atol=1e-4, rtol=1e-4), (
        float(jnp.max(jnp.abs(out - ref))))
    print("KERNEL_OK")
</pallas_src>

<mosaic_0001>
module attributes {stable_mosaic.version = 11 : i64} {
  func.func @fusion_kernel(%arg0: i32, %arg1: memref<1x8x460xf32, #tpu.memory_space<vmem>>, %arg2: memref<72x8xf32, #tpu.memory_space<vmem>>, %arg3: memref<8x1xf32, #tpu.memory_space<vmem>>, %arg4: memref<36x4xf32, #tpu.memory_space<vmem>>, %arg5: memref<4x1xf32, #tpu.memory_space<vmem>>, %arg6: memref<1x422xf32, #tpu.memory_space<vmem>>, %arg7: memref<1x4x384xf32, #tpu.memory_space<vmem>>) attributes {dimension_semantics = [#tpu.dimension_semantics<parallel>], iteration_bounds = array<i64: 2>, scalar_prefetch = 0 : i64, scratch_operands = 0 : i64, tpu.core_type = #tpu.core_type<tc>, window_params = [{transform_indices = @transform_0, window_bounds = array<i64: 1, 8, 460>}, {pipeline_mode = #tpu.pipeline_mode<synchronous>, transform_indices = @transform_1, window_bounds = array<i64: 72, 8>}, {pipeline_mode = #tpu.pipeline_mode<synchronous>, transform_indices = @transform_2, window_bounds = array<i64: 8, 1>}, {pipeline_mode = #tpu.pipeline_mode<synchronous>, transform_indices = @transform_3, window_bounds = array<i64: 36, 4>}, {pipeline_mode = #tpu.pipeline_mode<synchronous>, transform_indices = @transform_4, window_bounds = array<i64: 4, 1>}, {pipeline_mode = #tpu.pipeline_mode<synchronous>, transform_indices = @transform_5, window_bounds = array<i64: 1, 422>}, {transform_indices = @transform_6, window_bounds = array<i64: 1, 4, 384>}]} {
    %c0 = arith.constant 0 : index
    %c0_0 = arith.constant 0 : index
    %c0_1 = arith.constant 0 : index
    %0 = vector.load %arg1[%c0, %c0_0, %c0_1] : memref<1x8x460xf32, #tpu.memory_space<vmem>>, vector<1x8x460xf32>
    %1 = vector.shape_cast %0 : vector<1x8x460xf32> to vector<8x460xf32>
    %c0_2 = arith.constant 0 : index
    %c0_3 = arith.constant 0 : index
    %2 = vector.load %arg2[%c0_2, %c0_3] : memref<72x8xf32, #tpu.memory_space<vmem>>, vector<72x8xf32>
    %cst = arith.constant dense<0.000000e+00> : vector<72x460xf32>
    %3 = tpu.matmul %2, %1, %cst {dimension_numbers = #tpu.dot_dimension_numbers<[1], [0], [0], [1], [0, 0, 1, 1], [], []>} : vector<72x8xf32>, vector<8x460xf32>, vector<72x460xf32> -> vector<72x460xf32>
    %4 = vector.extract_strided_slice %3 {offsets = [0, 0], sizes = [8, 422], strides = [1, 1]} : vector<72x460xf32> to vector<8x422xf32>
    %5 = vector.extract_strided_slice %3 {offsets = [8, 1], sizes = [8, 422], strides = [1, 1]} : vector<72x460xf32> to vector<8x422xf32>
    %6 = arith.addf %4, %5 : vector<8x422xf32>
    %7 = vector.extract_strided_slice %3 {offsets = [16, 2], sizes = [8, 422], strides = [1, 1]} : vector<72x460xf32> to vector<8x422xf32>
    %8 = arith.addf %6, %7 : vector<8x422xf32>
    %9 = vector.extract_strided_slice %3 {offsets = [24, 18], sizes = [8, 422], strides = [1, 1]} : vector<72x460xf32> to vector<8x422xf32>
    %10 = arith.addf %8, %9 : vector<8x422xf32>
    %11 = vector.extract_strided_slice %3 {offsets = [32, 19], sizes = [8, 422], strides = [1, 1]} : vector<72x460xf32> to vector<8x422xf32>
    %12 = arith.addf %10, %11 : vector<8x422xf32>
    %13 = vector.extract_strided_slice %3 {offsets = [40, 20], sizes = [8, 422], strides = [1, 1]} : vector<72x460xf32> to vector<8x422xf32>
    %14 = arith.addf %12, %13 : vector<8x422xf32>
    %15 = vector.extract_strided_slice %3 {offsets = [48, 36], sizes = [8, 422], strides = [1, 1]} : vector<72x460xf32> to vector<8x422xf32>
    %16 = arith.addf %14, %15 : vector<8x422xf32>
    %17 = vector.extract_strided_slice %3 {offsets = [56, 37], sizes = [8, 422], strides = [1, 1]} : vector<72x460xf32> to vector<8x422xf32>
    %18 = arith.addf %16, %17 : vector<8x422xf32>
    %19 = vector.extract_strided_slice %3 {offsets = [64, 38], sizes = [8, 422], strides = [1, 1]} : vector<72x460xf32> to vector<8x422xf32>
    %20 = arith.addf %18, %19 : vector<8x422xf32>
    %c0_4 = arith.constant 0 : index
    %c0_5 = arith.constant 0 : index
    %21 = vector.load %arg3[%c0_4, %c0_5] : memref<8x1xf32, #tpu.memory_space<vmem>>, vector<8x1xf32>
    %22 = vector.broadcast %21 : vector<8x1xf32> to vector<8x422xf32>
    %23 = arith.addf %20, %22 : vector<8x422xf32>
    %24 = vector.extract_strided_slice %23 {offsets = [0, 0], sizes = [4, 422], strides = [1, 1]} : vector<8x422xf32> to vector<4x422xf32>
    %25 = vector.extract_strided_slice %23 {offsets = [4, 0], sizes = [4, 422], strides = [1, 1]} : vector<8x422xf32> to vector<4x422xf32>
    %26 = arith.mulf %24, %25 : vector<4x422xf32>
    %c0_6 = arith.constant 0 : index
    %c0_7 = arith.constant 0 : index
    %27 = vector.load %arg6[%c0_6, %c0_7] : memref<1x422xf32, #tpu.memory_space<vmem>>, vector<1x422xf32>
    %28 = vector.broadcast %27 : vector<1x422xf32> to vector<4x422xf32>
    %29 = arith.mulf %26, %28 : vector<4x422xf32>
    %c0_8 = arith.constant 0 : index
    %c0_9 = arith.constant 0 : index
    %30 = vector.load %arg4[%c0_8, %c0_9] : memref<36x4xf32, #tpu.memory_space<vmem>>, vector<36x4xf32>
    %cst_10 = arith.constant dense<0.000000e+00> : vector<36x422xf32>
    %31 = tpu.matmul %30, %29, %cst_10 {dimension_numbers = #tpu.dot_dimension_numbers<[1], [0], [0], [1], [0, 0, 1, 1], [], []>} : vector<36x4xf32>, vector<4x422xf32>, vector<36x422xf32> -> vector<36x422xf32>
    %32 = vector.extract_strided_slice %31 {offsets = [0, 0], sizes = [4, 384], strides = [1, 1]} : vector<36x422xf32> to vector<4x384xf32>
    %33 = vector.extract_strided_slice %31 {offsets = [4, 1], sizes = [4, 384], strides = [1, 1]} : vector<36x422xf32> to vector<4x384xf32>
    %34 = arith.addf %32, %33 : vector<4x384xf32>
    %35 = vector.extract_strided_slice %31 {offsets = [8, 2], sizes = [4, 384], strides = [1, 1]} : vector<36x422xf32> to vector<4x384xf32>
    %36 = arith.addf %34, %35 : vector<4x384xf32>
    %37 = vector.extract_strided_slice %31 {offsets = [12, 18], sizes = [4, 384], strides = [1, 1]} : vector<36x422xf32> to vector<4x384xf32>
    %38 = arith.addf %36, %37 : vector<4x384xf32>
    %39 = vector.extract_strided_slice %31 {offsets = [16, 19], sizes = [4, 384], strides = [1, 1]} : vector<36x422xf32> to vector<4x384xf32>
    %40 = arith.addf %38, %39 : vector<4x384xf32>
    %41 = vector.extract_strided_slice %31 {offsets = [20, 20], sizes = [4, 384], strides = [1, 1]} : vector<36x422xf32> to vector<4x384xf32>
    %42 = arith.addf %40, %41 : vector<4x384xf32>
    %43 = vector.extract_strided_slice %31 {offsets = [24, 36], sizes = [4, 384], strides = [1, 1]} : vector<36x422xf32> to vector<4x384xf32>
    %44 = arith.addf %42, %43 : vector<4x384xf32>
    %45 = vector.extract_strided_slice %31 {offsets = [28, 37], sizes = [4, 384], strides = [1, 1]} : vector<36x422xf32> to vector<4x384xf32>
    %46 = arith.addf %44, %45 : vector<4x384xf32>
    %47 = vector.extract_strided_slice %31 {offsets = [32, 38], sizes = [4, 384], strides = [1, 1]} : vector<36x422xf32> to vector<4x384xf32>
    %48 = arith.addf %46, %47 : vector<4x384xf32>
    %c0_11 = arith.constant 0 : index
    %c0_12 = arith.constant 0 : index
    %49 = vector.load %arg5[%c0_11, %c0_12] : memref<4x1xf32, #tpu.memory_space<vmem>>, vector<4x1xf32>
    %50 = vector.broadcast %49 : vector<4x1xf32> to vector<4x384xf32>
    %51 = arith.addf %48, %50 : vector<4x384xf32>
    %c0_13 = arith.constant 0 : index
    %c0_14 = arith.constant 0 : index
    %c0_15 = arith.constant 0 : index
    %52 = vector.load %arg7[%c0_13, %c0_14, %c0_15] : memref<1x4x384xf32, #tpu.memory_space<vmem>>, vector<1x4x384xf32>
    %53 = vector.shape_cast %52 : vector<1x4x384xf32> to vector<4x384xf32>
    %54 = vector.shape_cast %51 : vector<4x384xf32> to vector<1x4x384xf32>
    tpu.vector_store %arg7[%c0_13, %c0_14, %c0_15], %54 {strides = array<i32>} : memref<1x4x384xf32, #tpu.memory_space<vmem>>, vector<1x4x384xf32>,
    return
  }
  func.func @transform_0(%arg0: i32) -> (i32, i32, i32) {
    %c0_i32 = arith.constant 0 : i32
    %c0_i32_0 = arith.constant 0 : i32
    %c0_i32_1 = arith.constant 0 : i32
    return %arg0, %c0_i32, %c0_i32_0 : i32, i32, i32
  }
  func.func @transform_1(%arg0: i32) -> (i32, i32) {
    %c0_i32 = arith.constant 0 : i32
    %c0_i32_0 = arith.constant 0 : i32
    %c0_i32_1 = arith.constant 0 : i32
    return %c0_i32, %c0_i32_0 : i32, i32
  }
  func.func @transform_2(%arg0: i32) -> (i32, i32) {
    %c0_i32 = arith.constant 0 : i32
    %c0_i32_0 = arith.constant 0 : i32
    %c0_i32_1 = arith.constant 0 : i32
    return %c0_i32, %c0_i32_0 : i32, i32
  }
  func.func @transform_3(%arg0: i32) -> (i32, i32) {
    %c0_i32 = arith.constant 0 : i32
    %c0_i32_0 = arith.constant 0 : i32
    %c0_i32_1 = arith.constant 0 : i32
    return %c0_i32, %c0_i32_0 : i32, i32
  }
  func.func @transform_4(%arg0: i32) -> (i32, i32) {
    %c0_i32 = arith.constant 0 : i32
    %c0_i32_0 = arith.constant 0 : i32
    %c0_i32_1 = arith.constant 0 : i32
    return %c0_i32, %c0_i32_0 : i32, i32
  }
  func.func @transform_5(%arg0: i32) -> (i32, i32) {
    %c0_i32 = arith.constant 0 : i32
    %c0_i32_0 = arith.constant 0 : i32
    %c0_i32_1 = arith.constant 0 : i32
    return %c0_i32, %c0_i32_0 : i32, i32
  }
  func.func @transform_6(%arg0: i32) -> (i32, i32, i32) {
    %c0_i32 = arith.constant 0 : i32
    %c0_i32_0 = arith.constant 0 : i32
    %c0_i32_1 = arith.constant 0 : i32
    return %arg0, %c0_i32, %c0_i32_0 : i32, i32, i32
  }
}

</mosaic_0001>

<bundles_post_ra>
// kernel: tpu_custom_call.1
= control target key start
LH: loop header
LB: loop body
LE: loop exit
PB: predicated region body
PF: predicated region fallthrough
CT: control target
= control target key end

     0   :  { %11 = vsyncpa [#allocation3], 0  ;;  %s1708_s0 = inlined_call_operand.vmem [shape: f32[2,8,460], index: 0, kind: input, shape index: {}]   ;;  %s1709_s1 = inlined_call_operand.vmem [shape: f32[72,8], index: 1, kind: input, shape index: {}]   ;;  %s1710_s2 = inlined_call_operand.vmem [shape: f32[8,1], index: 2, kind: input, shape index: {}]   ;;  %s1711_s3 = inlined_call_operand.vmem [shape: f32[36,4], index: 3, kind: input, shape index: {}]   ;;  %s1712_s4 = inlined_call_operand.vmem [shape: f32[4,1], index: 4, kind: input, shape index: {}]   ;;  %s1713_s5 = inlined_call_operand.vmem [shape: f32[1,422], index: 5, kind: input, shape index: {}]   ;;  %s1714_s6 = inlined_call_operand.hbm [shape: f32[2,4,384], index: 6, kind: output, shape index: {}]  }
   0x1   :  { %13 = vsyncpa [#allocation3 + $0x1], 0  ;;  %s1354_s21 = smov 0   ;;  %s1356_s22 = smov 0  }
   0x2   :  { %s1358_s23 = smov 0   ;;  %s1360_s24 = smov 0  }
   0x3 LB: > { %s1375_s25 = sadd.s32 4294967295, %s1308_s24   ;;  %s1125_s26 = sadd.s32 4294967294, %s1308_s24   ;;  %s1308_s24 = sphi %s1360_s24, %s1720_s24   ;;  %s1304_s23 = sphi %s1358_s23, %s1719_s23   ;;  %s1300_s22 = sphi %s1356_s22, %s1718_s22   ;;  %s1296_s21 = sphi %s1354_s21, %s1717_s21  }
   0x4   : > { %s1379_s27 = sadd.s32 1, %s1308_s24   ;;  %s157_s28 = sadd.s32 1, %s1304_s23 }
   0x5   : > { %s154_s29 = ssub.s32 %s1308_s24, %s1379_s27  ;;  %p167_p0 = scmp.ne.s32.totalorder %s1304_s23, %s1300_s22 }
   0x6   : > { %p155_p1 = scmp.eq.s32.totalorder %s154_s29, 0  ;;  %p168_p2 = scmp.eq.s32.totalorder %s1375_s25, 1 }
   0x7   : > { %p173_p3 = scmp.ne.s32.totalorder %s1300_s22, %s1296_s21  ;;  %p174_p4 = scmp.eq.s32.totalorder %s1125_s26, 1 }
   0x8   : > { %s1390_s30 = scalar_select %p155_p1, %s1304_s23, %s157_s28  }
   0x9   : > { %p1392_p5 = por %p168_p2, %p167_p0  ;;  %p1396_p6 = por %p174_p4, %p173_p3 }
   0xa   : > { %p1128_p7 = scmp.ge.s32.totalorder %s1308_s24, 1  ;;  %p215_p8 = scmp.lt.s32.totalorder %s1308_s24, 3 }
   0xc   : > { %p216_p9 = pnand %p1128_p7, %p215_p8 }
   0xd   : > { %p245_p10 = scmp.lt.s32.totalorder (!%p216_p9), %s1375_s25, 1  ;;  %s1311_s19 = smov (!%p216_p9), 127  }
   0xe   : > { %219 = sbr.rel (%p216_p9) target bundleno = 716 (0x2cc), region = 44  ;;  %s1312_s20 = smov (!%p216_p9), 126  }
   0xf   : > { %s1313_s26 = smov (!%p216_p9), 110   ;;  %s1314_s28 = smov (!%p216_p9), 109  }
  0x10   : > { %s1315_s29 = smov (!%p216_p9), 108   ;;  %s1318_s11 = smov (!%p216_p9), 91  }
  0x13   : > { %s246_s9 = scalar_select %p245_p10, %s1375_s25, 1  ;;  %v254_v0 = vld [vmem:[%s1709_s1] sm:$0xff]  ;;  %vm263_vm0 = vcmask 64512   ;;  %v255_v5 = vld [vmem:[%s1709_s1 + $0x8] sm:$0xff]  ;;  %v256_v6 = vld [vmem:[%s1709_s1 + $0x10] sm:$0xff]  ;;  %v1310_v9 = vmov 0  }
  0x14   : > { %v257_v7 = vld [vmem:[%s1709_s1 + $0x18] sm:$0xff]  ;;  %v258_v8 = vld [vmem:[%s1709_s1 + $0x20] sm:$0xff]  ;;  %1245 = vset.pattern.permute.xlu0 %v1310_v9  ;;  %v259_v10 = vld [vmem:[%s1709_s1 + $0x28] sm:$0xff]  ;;  %vm527_vm1 = vcmask 900096   ;;  %vm479_vm2 = vcmask 1039360   ;;  %vm503_vm3 = vcmask 1031168  }
  0x15   : > { %s1194_s10 = sshll.u32 %s246_s9, 5  ;;  %v260_v11 = vld [vmem:[%s1709_s1 + $0x30] sm:$0xff]  ;;  %v261_v12 = vld [vmem:[%s1709_s1 + $0x38] sm:$0xff]  ;;  %v262_v13 = vld [vmem:[%s1709_s1 + $0x40] sm:$0xff]  ;;  %s1316_s9 = smov 92   ;;  %vm551_vm4 = vcmask 891904  }
  0x16   : > { %s249_s13 = scalar_lea.vmem %s1708_s0, %s1194_s10  ;;  %v659_v14 = vld [vmem:[%s1710_s2] sm:$0xff]  ;;  %s1317_s10 = smov 90   ;;  %vm575_vm5 = vcmask 883712   ;;  %vm599_vm6 = vcmask 752640   ;;  %vm647_vm7 = vcmask 736256   ;;  %vm623_vm8 = vcmask 744448  }
  0x17   : > { %v251_v1 = vld [vmem:[%s249_s13 + $0x8] sm:$0xff]  ;;  %v250_v2 = vld [vmem:[%s249_s13] sm:$0xff]  ;;  %v252_v3 = vld [vmem:[%s249_s13 + $0x10] sm:$0xff]  ;;  %662 = vperm.xlu0 %1245, %v659_v14   ;;  %vm720_vm9 = vcmask 1043456   ;;  %vm704_vm10 = vcmask 31744  }
  0x18   : > { %350 = vmatpush.msra.mxu1 %v251_v1  ;;  %306 = vmatpush.msra.mxu0 %v250_v2  ;;  %v253_v4 = vld [vmem:[%s249_s13 + $0x18] sm:$0xff] }
  0x19   : > { %1140 = vmatmul.msk.f32.vlgmr.msra.gmra.mxu1 %vm263_vm0, %v254_v0  ;;  %1131 = vmatmul.msk.f32.vlgmr.msra.gmra.mxu0 %vm263_vm0, %v254_v0 }
  0x1a   : > { %394 = vmatpush.msra.mxu2 %v252_v3  ;;  %438 = vmatpush.msra.mxu3 %v253_v4 }
  0x1b   : > { %1149 = vmatmul.msk.f32.vlgmr.msra.gmra.mxu2 %vm263_vm0, %v254_v0  ;;  %1158 = vmatmul.msk.f32.vlgmr.msra.gmra.mxu3 %vm263_vm0, %v254_v0 }
  0x21   : > { %1141 = vmatmul.msk.f32.gmra.mxu1 %vm263_vm0, %v255_v5  ;;  %1132 = vmatmul.msk.f32.gmra.mxu0 %vm263_vm0, %v255_v5 }
  0x23   : > { %1150 = vmatmul.msk.f32.gmra.mxu2 %vm263_vm0, %v255_v5  ;;  %1159 = vmatmul.msk.f32.gmra.mxu3 %vm263_vm0, %v255_v5 }
  0x29   : > { %1142 = vmatmul.msk.f32.gmra.mxu1 %vm263_vm0, %v256_v6  ;;  %1133 = vmatmul.msk.f32.gmra.mxu0 %vm263_vm0, %v256_v6 }
  0x2b   : > { %1151 = vmatmul.msk.f32.gmra.mxu2 %vm263_vm0, %v256_v6  ;;  %1160 = vmatmul.msk.f32.gmra.mxu3 %vm263_vm0, %v256_v6 }
  0x31   : > { %1143 = vmatmul.msk.f32.gmra.mxu1 %vm263_vm0, %v257_v7  ;;  %1134 = vmatmul.msk.f32.gmra.mxu0 %vm263_vm0, %v257_v7 }
  0x33   : > { %1152 = vmatmul.msk.f32.gmra.mxu2 %vm263_vm0, %v257_v7  ;;  %1161 = vmatmul.msk.f32.gmra.mxu3 %vm263_vm0, %v257_v7 }
  0x39   : > { %1144 = vmatmul.msk.f32.gmra.mxu1 %vm263_vm0, %v258_v8  ;;  %1135 = vmatmul.msk.f32.gmra.mxu0 %vm263_vm0, %v258_v8 }
  0x3b   : > { %1153 = vmatmul.msk.f32.gmra.mxu2 %vm263_vm0, %v258_v8  ;;  %1162 = vmatmul.msk.f32.gmra.mxu3 %vm263_vm0, %v258_v8 }
  0x41   : > { %1145 = vmatmul.msk.f32.gmra.mxu1 %vm263_vm0, %v259_v10  ;;  %1136 = vmatmul.msk.f32.gmra.mxu0 %vm263_vm0, %v259_v10 }
  0x43   : > { %1154 = vmatmul.msk.f32.gmra.mxu2 %vm263_vm0, %v259_v10  ;;  %1163 = vmatmul.msk.f32.gmra.mxu3 %vm263_vm0, %v259_v10 }
  0x49   : > { %1137 = vmatmul.msk.f32.gmra.mxu0 %vm263_vm0, %v260_v11  ;;  %1146 = vmatmul.msk.f32.gmra.mxu1 %vm263_vm0, %v260_v11 }
  0x4b   : > { %1155 = vmatmul.msk.f32.gmra.mxu2 %vm263_vm0, %v260_v11  ;;  %1164 = vmatmul.msk.f32.gmra.mxu3 %vm263_vm0, %v260_v11 }
  0x51   : > { %1147 = vmatmul.msk.f32.gmra.mxu1 %vm263_vm0, %v261_v12  ;;  %1138 = vmatmul.msk.f32.gmra.mxu0 %vm263_vm0, %v261_v12 }
  0x53   : > { %1165 = vmatmul.msk.f32.gmra.mxu3 %vm263_vm0, %v261_v12  ;;  %1156 = vmatmul.msk.f32.gmra.mxu2 %vm263_vm0, %v261_v12 }
  0x59   : > { %1139 = vmatmul.msk.f32.gmra.mxu0 %vm263_vm0, %v262_v13  ;;  %1148 = vmatmul.msk.f32.gmra.mxu1 %vm263_vm0, %v262_v13 }
  0x5b   : > { %1166 = vmatmul.msk.f32.gmra.mxu3 %vm263_vm0, %v262_v13  ;;  %1157 = vmatmul.msk.f32.gmra.mxu2 %vm263_vm0, %v262_v13 }
  0x89   : > { %v1513_v51 = vpop.permute.xlu0 %662 }
  0x96   : > { %v1473_v15 = vpop.f32.mrf.mxu1  ;;  %v1475_v16 = vpop.f32.mrf.mxu0 }
  0x9e   : > { %v355_v17 = vpop.f32.mrf.mxu1  ;;  %v1478_v18 = vpop.f32.mrf.mxu2 }
  0x9f   : > { %473 = vrot.lane.b32.xlu0 %v355_v17, %s1311_s19  ;;  %v1480_v19 = vpop.f32.mrf.mxu3  ;;  %v311_v20 = vpop.f32.mrf.mxu0 }
  0xa6   : > { %v358_v21 = vpop.f32.mrf.mxu1  ;;  %v399_v22 = vpop.f32.mrf.mxu2 }
  0xa7   : > { %497 = vrot.lane.b32.xlu1 %v358_v21, %s1312_s20  ;;  %471 = vrot.lane.b32.xlu0 %v311_v20, %s1311_s19  ;;  %v443_v23 = vpop.f32.mrf.mxu3  ;;  %v314_v24 = vpop.f32.mrf.mxu0 }
  0xae   : > { %v361_v25 = vpop.f32.mrf.mxu1  ;;  %v402_v26 = vpop.f32.mrf.mxu2 }
  0xaf   : > { %521 = vrot.lane.b32.xlu2 %v361_v25, %s1313_s26  ;;  %475 = vrot.lane.b32.xlu0 %v399_v22, %s1311_s19  ;;  %v446_v27 = vpop.f32.mrf.mxu3  ;;  %v317_v28 = vpop.f32.mrf.mxu0 }
  0xb0   : > { %495 = vrot.lane.b32.xlu1 %v314_v24, %s1312_s20 }
  0xb6   : > { %v405_v29 = vpop.f32.mrf.mxu2  ;;  %v364_v31 = vpop.f32.mrf.mxu1 }
  0xb7   : > { %477 = vrot.lane.b32.xlu0 %v443_v23, %s1311_s19  ;;  %519 = vrot.lane.b32.xlu2 %v317_v28, %s1313_s26  ;;  %v449_v30 = vpop.f32.mrf.mxu3  ;;  %v320_v34 = vpop.f32.mrf.mxu0 }
  0xb8   : > { %499 = vrot.lane.b32.xlu1 %v402_v26, %s1312_s20 }
  0xbe   : > { %v408_v33 = vpop.f32.mrf.mxu2  ;;  %v367_v38 = vpop.f32.mrf.mxu1 }
  0xbf   : > { %545 = vrot.lane.b32.xlu0 %v364_v31, %s1314_s28  ;;  %523 = vrot.lane.b32.xlu2 %v405_v29, %s1313_s26  ;;  %v452_v32 = vpop.f32.mrf.mxu3  ;;  %v323_v36 = vpop.f32.mrf.mxu0 }
  0xc0   : > { %501 = vrot.lane.b32.xlu1 %v446_v27, %s1312_s20 }
  0xc6   : > { %v411_v37 = vpop.f32.mrf.mxu2  ;;  %v370_v43 = vpop.f32.mrf.mxu1 }
  0xc7   : > { %525 = vrot.lane.b32.xlu2 %v449_v30, %s1313_s26  ;;  %543 = vrot.lane.b32.xlu0 %v320_v34, %s1314_s28  ;;  %v455_v35 = vpop.f32.mrf.mxu3  ;;  %v326_v40 = vpop.f32.mrf.mxu0 }
  0xc8   : > { %547 = vrot.lane.b32.xlu1 %v408_v33, %s1314_s28 }
  0xce   : > { %v414_v41 = vpop.f32.mrf.mxu2  ;;  %v373_v46 = vpop.f32.mrf.mxu1 }
  0xcf   : > { %549 = vrot.lane.b32.xlu2 %v452_v32, %s1314_s28  ;;  %573 = vrot.lane.b32.xlu0 %v455_v35, %s1315_s29  ;;  %v458_v39 = vpop.f32.mrf.mxu3  ;;  %v329_v44 = vpop.f32.mrf.mxu0 }
  0xd0   : > { %569 = vrot.lane.b32.xlu1 %v367_v38, %s1315_s29 }
  0xd6   : > { %v417_v48 = vpop.f32.mrf.mxu2  ;;  %v376_v50 = vpop.f32.mrf.mxu1 }
  0xd7   : > { %571 = vrot.lane.b32.xlu2 %v411_v37, %s1315_s29  ;;  %595 = vrot.lane.b32.xlu0 %v414_v41, %s1316_s9  ;;  %v461_v42 = vpop.f32.mrf.mxu3  ;;  %v332_v47 = vpop.f32.mrf.mxu0 }
  0xd8   : > { %567 = vrot.lane.b32.xlu1 %v323_v36, %s1315_s29 }
  0xde   : > { %v420_v49 = vpop.f32.mrf.mxu2 }
  0xdf   : > { %593 = vrot.lane.b32.xlu2 %v370_v43, %s1316_s9  ;;  %v464_v45 = vpop.f32.mrf.mxu3 }
  0xe0   : > { %591 = vrot.lane.b32.xlu1 %v326_v40, %s1316_s9  ;;  %645 = vrot.lane.b32.xlu0 %v464_v45, %s1317_s10 }
  0xe7   : > { %617 = vrot.lane.b32.xlu2 %v373_v46, %s1318_s11 }
  0xe8   : > { %597 = vrot.lane.b32.xlu1 %v458_v39, %s1316_s9  ;;  %639 = vrot.lane.b32.xlu0 %v332_v47, %s1317_s10 }
  0xef   : > { %621 = vrot.lane.b32.xlu2 %v461_v42, %s1318_s11 }
  0xf0   : > { %619 = vrot.lane.b32.xlu1 %v417_v48, %s1318_s11 }
  0xf7   : > { %643 = vrot.lane.b32.xlu2 %v420_v49, %s1317_s10 }
  0xf8   : > { %615 = vrot.lane.b32.xlu1 %v329_v44, %s1318_s11 }
  0xff   : > { %641 = vrot.lane.b32.xlu2 %v376_v50, %s1317_s10  ;;  %v685_v50 = vld [vmem:[%s1713_s5] sm:$0xf] }
 0x109   : > { %v522_v52 = vpop.permute.xlu2 %521 }
 0x111   : > { %v474_v53 = vpop.permute.xlu0 %473  ;;  %v520_v54 = vpop.permute.xlu2 %519 }
 0x112   : > { %v528_v55 = vsel %vm527_vm1, %v520_v54, %v522_v52 }
 0x119   : > { %v498_v56 = vpop.permute.xlu1 %497  ;;  %v472_v57 = vpop.permute.xlu0 %471 }
 0x11a   : > { %v524_v58 = vpop.permute.xlu2 %523  ;;  %v480_v59 = vsel %vm479_vm2, %v472_v57, %v474_v53 }
 0x11b   : > { %v487_v61 = vadd.f32 %v480_v59, %v1475_v16  ;;  %v529_v35 = vsel %vm527_vm1, %v522_v52, %v524_v58 }
 0x121   : > { %v476_v60 = vpop.permute.xlu0 %475 }
 0x122   : > { %v496_v62 = vpop.permute.xlu1 %495  ;;  %v526_v63 = vpop.permute.xlu2 %525  ;;  %v481_v23 = vsel %vm479_vm2, %v474_v53, %v476_v60 }
 0x123   : > { %v504_v0 = vsel %vm503_vm3, %v496_v62, %v498_v56  ;;  %v488_v29 = vadd.f32 %v481_v23, %v1473_v15  ;;  %v530_v37 = vsel %vm527_vm1, %v524_v58, %v526_v63 }
 0x124   : > { %v511_v1 = vadd.f32 %v504_v0, %v487_v61  ;;  %v690_v61 = vperm.slane %v685_v50, 3 }
 0x126   : > { %v1519_v2 = vadd.f32 %v528_v55, %v511_v1 }
 0x129   : > { %v478_v5 = vpop.permute.xlu0 %477 }
 0x12a   : > { %v500_v3 = vpop.permute.xlu1 %499  ;;  %v550_v4 = vpop.permute.xlu2 %549  ;;  %v490_v17 = vadd.f32 %v478_v5, %v1480_v19  ;;  %v482_v24 = vsel %vm479_vm2, %v476_v60, %v478_v5 }
 0x12b   : > { %v505_v27 = vsel %vm503_vm3, %v498_v56, %v500_v3  ;;  %v489_v30 = vadd.f32 %v482_v24, %v1478_v18  ;;  %v688_v24 = vperm.slane %v685_v50, 1 }
 0x12c   : > { %v512_v19 = vadd.f32 %v505_v27, %v488_v29 }
 0x12e   : > { %v536_v15 = vadd.f32 %v529_v35, %v512_v19  ;;  %v687_v35 = vperm.slane %v685_v50, 0 }
 0x131   : > { %v546_v8 = vpop.permute.xlu0 %545 }
 0x132   : > { %v502_v6 = vpop.permute.xlu1 %501  ;;  %v572_v7 = vpop.permute.xlu2 %571 }
 0x133   : > { %v514_v21 = vadd.f32 %v502_v6, %v490_v17  ;;  %v506_v28 = vsel %vm503_vm3, %v500_v3, %v502_v6 }
 0x134   : > { %v513_v33 = vadd.f32 %v506_v28, %v489_v30 }
 0x135   : > { %v538_v25 = vadd.f32 %v526_v63, %v514_v21 }
 0x136   : > { %v537_v41 = vadd.f32 %v530_v37, %v513_v33 }
 0x137   : > { %v562_v32 = vadd.f32 %v550_v4, %v538_v25 }
 0x139   : > { %v544_v11 = vpop.permute.xlu0 %543 }
 0x13a   : > { %v548_v9 = vpop.permute.xlu1 %547  ;;  %v1521_v10 = vpop.permute.xlu2 %593  ;;  %v552_v55 = vsel %vm551_vm4, %v544_v11, %v546_v8 }
 0x13b   : > { %v553_v38 = vsel %vm551_vm4, %v546_v8, %v548_v9  ;;  %v554_v39 = vsel %vm551_vm4, %v548_v9, %v550_v4 }
 0x13c   : > { %v560_v45 = vadd.f32 %v553_v38, %v536_v15  ;;  %v561_v46 = vadd.f32 %v554_v39, %v537_v41  ;;  %v702_v38 = vld [vmem:[%s1711_s3 + $0x18] sm:$0xff]  ;;  %v703_v39 = vld [vmem:[%s1711_s3 + $0x20] sm:$0xf] }
 0x141   : > { %v574_v14 = vpop.permute.xlu0 %573 }
 0x142   : > { %v570_v12 = vpop.permute.xlu1 %569  ;;  %v1523_v13 = vpop.permute.xlu2 %617  ;;  %v586_v34 = vadd.f32 %v574_v14, %v562_v32  ;;  %v578_v43 = vsel %vm575_vm5, %v572_v7, %v574_v14 }
 0x143   : > { %v577_v42 = vsel %vm575_vm5, %v570_v12, %v572_v7  ;;  %v585_v53 = vadd.f32 %v578_v43, %v561_v46  ;;  %v559_v7 = vadd.f32 %v552_v55, %v1519_v2  ;;  %v699_v2 = vld [vmem:[%s1711_s3] sm:$0xff] }
 0x144   : > { %v584_v52 = vadd.f32 %v577_v42, %v560_v45 }
 0x149   : > { %v596_v26 = vpop.permute.xlu0 %595 }
 0x14a   : > { %v568_v16 = vpop.permute.xlu1 %567  ;;  %v622_v20 = vpop.permute.xlu2 %621  ;;  %v601_v47 = vsel %vm599_vm6, %v1521_v10, %v596_v26 }
 0x14b   : > { %v608_v57 = vadd.f32 %v601_v47, %v584_v52  ;;  %v576_v5 = vsel %vm575_vm5, %v568_v16, %v570_v12 }
 0x14c   : > { %v583_v17 = vadd.f32 %v576_v5, %v559_v7 }
 0x152   : > { %v592_v22 = vpop.permute.xlu1 %591  ;;  %v644_v31 = vpop.permute.xlu2 %643 }
 0x153   : > { %v646_v18 = vpop.permute.xlu0 %645  ;;  %v600_v11 = vsel %vm599_vm6, %v592_v22, %v1521_v10  ;;  %v689_v10 = vperm.slane %v685_v50, 2 }
 0x154   : > { %v650_v59 = vsel %vm647_vm7, %v644_v31, %v646_v18  ;;  %v607_v12 = vadd.f32 %v600_v11, %v583_v17  ;;  %v1033_v17 = vld [vmem:[%s1712_s4] sm:$0xf] }
 0x15a   : > { %v598_v36 = vpop.permute.xlu1 %597  ;;  %v642_v54 = vpop.permute.xlu2 %641 }
 0x15b   : > { %v610_v40 = vadd.f32 %v598_v36, %v586_v34  ;;  %v602_v48 = vsel %vm599_vm6, %v596_v26, %v598_v36  ;;  %v649_v1 = vsel %vm647_vm7, %v642_v54, %v644_v31  ;;  %v640_v23 = vpop.permute.xlu0 %639 }
 0x15c   : > { %v609_v58 = vadd.f32 %v602_v48, %v585_v53  ;;  %v648_v27 = vsel %vm647_vm7, %v640_v23, %v642_v54 }
 0x15d   : > { %v634_v44 = vadd.f32 %v622_v20, %v610_v40 }
 0x15f   : > { %v658_v49 = vadd.f32 %v646_v18, %v634_v44 }
 0x161   : > { %v668_v56 = vadd.f32 %v1513_v51, %v658_v49 }
 0x162   : > { %v620_v60 = vpop.permute.xlu1 %619 }
 0x163   : > { %v676_v62 = vrot.slane %v668_v56, 4  ;;  %v625_v63 = vsel %vm623_vm8, %v1523_v13, %v620_v60  ;;  %v626_v0 = vsel %vm623_vm8, %v620_v60, %v622_v20 }
 0x164   : > { %v632_v3 = vadd.f32 %v625_v63, %v608_v57  ;;  %v633_v4 = vadd.f32 %v626_v0, %v609_v58 }
 0x165   : > { %v684_v6 = vmul.f32 %v676_v62, %v668_v56 }
 0x166   : > { %v657_v8 = vadd.f32 %v650_v59, %v633_v4  ;;  %v656_v9 = vadd.f32 %v649_v1, %v632_v3 }
 0x167   : > { %v698_v14 = vmul.f32 %v690_v61, %v684_v6 }
 0x168   : > { %v667_v21 = vadd.f32 %v1513_v51, %v657_v8  ;;  %v666_v20 = vadd.f32 %v1513_v51, %v656_v9 }
 0x169   : > { %1185 = vmatpush.msk.msrb.mxu3 %vm720_vm9, %v698_v14 }
 0x16a   : > { %v674_v16 = vrot.slane %v666_v20, 4  ;;  %v616_v25 = vpop.permute.xlu1 %615  ;;  %v675_v26 = vrot.slane %v667_v21, 4  ;;  %1186 = vmatmul.msk.f32.vlgmr.msrb.gmra.mxu3 %vm704_vm10, %v699_v2 }
 0x16b   : > { %v624_v22 = vsel %vm623_vm8, %v616_v25, %v1523_v13  ;;  %v700_v13 = vld [vmem:[%s1711_s3 + $0x8] sm:$0xff] }
 0x16c   : > { %v631_v28 = vadd.f32 %v624_v22, %v607_v12  ;;  %v682_v29 = vmul.f32 %v674_v16, %v666_v20  ;;  %v683_v30 = vmul.f32 %v675_v26, %v667_v21 }
 0x16e   : > { %v655_v31 = vadd.f32 %v648_v27, %v631_v28  ;;  %v696_v32 = vmul.f32 %v688_v24, %v682_v29  ;;  %v697_v19 = vmul.f32 %v689_v10, %v683_v30 }
 0x170   : > { %v665_v33 = vadd.f32 %v1513_v51, %v655_v31  ;;  %1173 = vmatpush.msk.msrb.mxu1 %vm720_vm9, %v696_v32  ;;  %1179 = vmatpush.msk.msrb.mxu2 %vm720_vm9, %v697_v19  ;;  %v701_v51 = vld [vmem:[%s1711_s3 + $0x10] sm:$0xff] }
 0x171   : > { %1174 = vmatmul.msk.f32.vlgmr.msrb.gmra.mxu1 %vm704_vm10, %v699_v2  ;;  %1180 = vmatmul.msk.f32.vlgmr.msrb.gmra.mxu2 %vm704_vm10, %v699_v2 }
 0x172   : > { %v673_v34 = vrot.slane %v665_v33, 4  ;;  %1187 = vmatmul.msk.f32.gmra.mxu3 %vm704_vm10, %v700_v13 }
 0x174   : > { %v681_v36 = vmul.f32 %v673_v34, %v665_v33 }
 0x176   : > { %v695_v37 = vmul.f32 %v687_v35, %v681_v36 }
 0x178   : > { %1167 = vmatpush.msk.msrb.mxu0 %vm720_vm9, %v695_v37 }
 0x179   : > { %1168 = vmatmul.msk.f32.vlgmr.msrb.gmra.mxu0 %vm704_vm10, %v699_v2  ;;  %1175 = vmatmul.msk.f32.gmra.mxu1 %vm704_vm10, %v700_v13 }
 0x17a   : > { %1181 = vmatmul.msk.f32.gmra.mxu2 %vm704_vm10, %v700_v13  ;;  %1188 = vmatmul.msk.f32.gmra.mxu3 %vm704_vm10, %v701_v51 }
 0x181   : > { %1169 = vmatmul.msk.f32.gmra.mxu0 %vm704_vm10, %v700_v13  ;;  %1176 = vmatmul.msk.f32.gmra.mxu1 %vm704_vm10, %v701_v51 }
 0x182   : > { %1182 = vmatmul.msk.f32.gmra.mxu2 %vm704_vm10, %v701_v51  ;;  %1189 = vmatmul.msk.f32.gmra.mxu3 %vm704_vm10, %v702_v38 }
 0x189   : > { %1170 = vmatmul.msk.f32.gmra.mxu0 %vm704_vm10, %v701_v51  ;;  %1177 = vmatmul.msk.f32.gmra.mxu1 %vm704_vm10, %v702_v38 }
 0x18a   : > { %1183 = vmatmul.msk.f32.gmra.mxu2 %vm704_vm10, %v702_v38  ;;  %1190 = vmatmul.msk.f32.gmra.mxu3 %vm704_vm10, %v703_v39 }
 0x191   : > { %1171 = vmatmul.msk.f32.gmra.mxu0 %vm704_vm10, %v702_v38  ;;  %1178 = vmatmul.msk.f32.gmra.mxu1 %vm704_vm10, %v703_v39 }
 0x192   : > { %1184 = vmatmul.msk.f32.gmra.mxu2 %vm704_vm10, %v703_v39 }
 0x199   : > { %1172 = vmatmul.msk.f32.gmra.mxu0 %vm704_vm10, %v703_v39 }
 0x1ed   : > { %v846_v42 = vpop.f32.mrf.mxu3 }
 0x1ee   : > { %v1600_v40 = vpop.f32.mrf.mxu1  ;;  %v868_v43 = vrot.slane %v846_v42, 4 }
 0x1ef   : > { %v866_v15 = vrot.slane %v1600_v40, 4 }
 0x1f1   : > { %871 = vrot.lane.b32.xlu2 %v866_v15, %s1311_s19 }
 0x1f4   : > { %v1608_v45 = vpop.f32.mrf.mxu2 }
 0x1f5   : > { %v849_v48 = vpop.f32.mrf.mxu3  ;;  %v867_v50 = vrot.slane %v1608_v45, 4 }
 0x1f6   : > { %v1604_v41 = vpop.f32.mrf.mxu0  ;;  %v785_v47 = vpop.f32.mrf.mxu1  ;;  %v910_v56 = vrot.slane %v849_v48, 4 }
 0x1f7   : > { %v865_v18 = vrot.slane %v1604_v41, 4  ;;  %v908_v49 = vrot.slane %v785_v47, 4 }
 0x1f9   : > { %869 = vrot.lane.b32.xlu1 %v865_v18, %s1311_s19 }
 0x1fd   : > { %v817_v52 = vpop.f32.mrf.mxu2  ;;  %v852_v62 = vpop.f32.mrf.mxu3 }
 0x1fe   : > { %v753_v44 = vpop.f32.mrf.mxu0  ;;  %v909_v53 = vrot.slane %v817_v52, 4  ;;  %v788_v55 = vpop.f32.mrf.mxu1  ;;  %v952_v0 = vrot.slane %v852_v62, 4 }
 0x1ff   : > { %v907_v46 = vrot.slane %v753_v44, 4  ;;  %890 = vrot.lane.b32.xlu2 %v753_v44, %s1312_s20  ;;  %v950_v59 = vrot.slane %v788_v55, 4 }
 0x201   : > { %875 = vrot.lane.b32.xlu1 %v868_v43, %s1311_s19  ;;  %911 = vrot.lane.b32.xlu0 %v907_v46, %s1313_s26 }
 0x205   : > { %v820_v61 = vpop.f32.mrf.mxu2  ;;  %v855_v4 = vpop.f32.mrf.mxu3 }
 0x206   : > { %v756_v54 = vpop.f32.mrf.mxu0  ;;  %v791_v63 = vpop.f32.mrf.mxu1  ;;  %v951_v1 = vrot.slane %v820_v61, 4  ;;  %v994_v11 = vrot.slane %v855_v4, 4 }
 0x207   : > { %896 = vrot.lane.b32.xlu2 %v849_v48, %s1312_s20  ;;  %v949_v57 = vrot.slane %v756_v54, 4  ;;  %v992_v5 = vrot.slane %v791_v63, 4 }
 0x209   : > { %913 = vrot.lane.b32.xlu1 %v908_v49, %s1313_s26  ;;  %873 = vrot.lane.b32.xlu0 %v867_v50, %s1311_s19  ;;  %s1266_s19 = scalar_lea.hbm %s1714_s6, 24 }
 0x20d   : > { %v823_v3 = vpop.f32.mrf.mxu2  ;;  %v858_v9 = vpop.f32.mrf.mxu3 }
 0x20e   : > { %v759_v58 = vpop.f32.mrf.mxu0  ;;  %v993_v6 = vrot.slane %v823_v3, 4  ;;  %v794_v8 = vpop.f32.mrf.mxu1 }
 0x20f   : > { %915 = vrot.lane.b32.xlu2 %v909_v53, %s1313_s26  ;;  %v991_v60 = vrot.slane %v759_v58, 4 }
 0x211   : > { %892 = vrot.lane.b32.xlu0 %v785_v47, %s1312_s20  ;;  %932 = vrot.lane.b32.xlu1 %v756_v54, %s1314_s28 }
 0x215   : > { %v826_v7 = vpop.f32.mrf.mxu2 }
 0x216   : > { %v762_v14 = vpop.f32.mrf.mxu0 }
 0x217   : > { %934 = vrot.lane.b32.xlu2 %v788_v55, %s1314_s28 }
 0x219   : > { %917 = vrot.lane.b32.xlu0 %v910_v56, %s1313_s26  ;;  %953 = vrot.lane.b32.xlu1 %v949_v57, %s1315_s29  ;;  %s242_s26 = sand.u32 1, %s1300_s22  }
 0x21a   : > { %s1050_s12 = scalar_lea.sflag [#allocation3], %s242_s26 }
 0x21f   : > { %955 = vrot.lane.b32.xlu2 %v950_v59, %s1315_s29 }
 0x221   : > { %894 = vrot.lane.b32.xlu1 %v817_v52, %s1312_s20  ;;  %995 = vrot.lane.b32.xlu0 %v991_v60, %s1318_s11 }
 0x227   : > { %974 = vrot.lane.b32.xlu2 %v759_v58, %s1316_s9 }
 0x229   : > { %938 = vrot.lane.b32.xlu1 %v852_v62, %s1314_s28  ;;  %936 = vrot.lane.b32.xlu0 %v820_v61, %s1314_s28  ;;  %s1196_s28 = smul.u32 12, %s1375_s25 }
 0x22b   : > { %s1061_s25 = scalar_lea.hbm %s1714_s6, %s1196_s28 }
 0x22c   : > { %s1065_s18 = sshll.u32 %s1061_s25, 4  ;;  %s1066_s18 = int_to_ptr.hbm [resolvable:$true] %s1065_s18 }
 0x22d   : > { %s1260_s13 = sshra.s32 %s1066_s18, 4  ;;  %s1261_s13 = int_to_ptr.hbm [resolvable:$true] %s1260_s13 }
 0x22e   : > { %s1262_s14 = scalar_lea.hbm %s1261_s13, 12  ;;  %p1267_p0 = scmp.lt.s32.totalorder %s1261_s13, %s1714_s6 }
 0x22f   : > { %976 = vrot.lane.b32.xlu2 %v791_v63, %s1316_s9  ;;  %p1263_p11 = scmp.ne.s32.totalorder %s1261_s13, %s1262_s14  ;;  %p1268_p1 = scmp.lt.s32.totalorder %s1266_s19, %s1262_s14 }
 0x231   : > { %959 = vrot.lane.b32.xlu1 %v952_v0, %s1315_s29  ;;  %957 = vrot.lane.b32.xlu0 %v951_v1, %s1315_s29  ;;  %s1195_s29 = smul.u32 12, %s242_s26  ;;  %p1264_p12 = pnand %p1263_p11, %p1392_p5 }
 0x232   : > { %p1269_p2 = por %p1268_p1, %p1267_p0 }
 0x233   : > { %p1265_p13 = pneg %p1264_p12 }
 0x235   : > { %p1270_p3 = pnand %p1269_p2, %p1265_p13 }
 0x237   : > { %980 = vrot.lane.b32.xlu2 %v855_v4, %s1316_s9 }
 0x239   : > { %999 = vrot.lane.b32.xlu1 %v993_v6, %s1318_s11  ;;  %997 = vrot.lane.b32.xlu0 %v992_v5, %s1318_s11 }
 0x23f   : > { %1020 = vrot.lane.b32.xlu2 %v826_v7, %s1317_s10 }
 0x241   : > { %1018 = vrot.lane.b32.xlu1 %v794_v8, %s1317_s10  ;;  %978 = vrot.lane.b32.xlu0 %v823_v3, %s1316_s9 }
 0x247   : > { %1022 = vrot.lane.b32.xlu2 %v858_v9, %s1317_s10 }
 0x249   : > { %1001 = vrot.lane.b32.xlu0 %v994_v11, %s1318_s11  ;;  %1016 = vrot.lane.b32.xlu1 %v762_v14, %s1317_s10  ;;  %s244_s11 = scalar_lea.vmem [#allocation2], %s1195_s29 }
 0x24a   : > { %s1063_s17 = sshll.u32 %s244_s11, 4  ;;  %s1064_s17 = int_to_ptr.vmem [resolvable:$true] %s1063_s17 }
 0x24b   : > { %v872_v21 = vpop.permute.xlu2 %871 }
 0x251   : > { %1036 = vperm.xlu0 %1245, %v1033_v17  }
 0x259   : > { %v891_v20 = vpop.permute.xlu2 %890 }
 0x261   : > { %v897_v2 = vpop.permute.xlu2 %896 }
 0x269   : > { %v916_v10 = vpop.permute.xlu2 %915 }
 0x26b   : > { %v870_v23 = vpop.permute.xlu1 %869 }
 0x26c   : > { %v877_v24 = vsel %vm479_vm2, %v870_v23, %v872_v21 }
 0x26d   : > { %v883_v22 = vadd.f32 %v877_v24, %v1604_v41 }
 0x271   : > { %v935_v31 = vpop.permute.xlu2 %934 }
 0x273   : > { %v876_v12 = vpop.permute.xlu1 %875  ;;  %v912_v16 = vpop.permute.xlu0 %911 }
 0x279   : > { %v956_v34 = vpop.permute.xlu2 %955 }
 0x27b   : > { %v914_v25 = vpop.permute.xlu1 %913  ;;  %v874_v26 = vpop.permute.xlu0 %873 }
 0x27c   : > { %v919_v32 = vsel %vm527_vm1, %v912_v16, %v914_v25  ;;  %v878_v18 = vsel %vm479_vm2, %v872_v21, %v874_v26  ;;  %v879_v46 = vsel %vm479_vm2, %v874_v26, %v876_v12  ;;  %v920_v54 = vsel %vm527_vm1, %v914_v25, %v916_v10 }
 0x27d   : > { %v884_v48 = vadd.f32 %v878_v18, %v1600_v40  ;;  %v885_v50 = vadd.f32 %v879_v46, %v1608_v45 }
 0x281   : > { %v975_v37 = vpop.permute.xlu2 %974 }
 0x283   : > { %v893_v27 = vpop.permute.xlu0 %892  ;;  %v933_v28 = vpop.permute.xlu1 %932 }
 0x284   : > { %v898_v29 = vsel %vm503_vm3, %v891_v20, %v893_v27  ;;  %v940_v45 = vsel %vm551_vm4, %v933_v28, %v935_v31 }
 0x285   : > { %v904_v30 = vadd.f32 %v898_v29, %v883_v22 }
 0x287   : > { %v925_v19 = vadd.f32 %v919_v32, %v904_v30 }
 0x289   : > { %v977_v41 = vpop.permute.xlu2 %976  ;;  %v946_v7 = vadd.f32 %v940_v45, %v925_v19 }
 0x28a   : > { %v982_v16 = vsel %vm599_vm6, %v975_v37, %v977_v41 }
 0x28b   : > { %v918_v33 = vpop.permute.xlu0 %917  ;;  %v954_v13 = vpop.permute.xlu1 %953 }
 0x28c   : > { %v921_v60 = vsel %vm527_vm1, %v916_v10, %v918_v33  ;;  %v961_v5 = vsel %vm575_vm5, %v954_v13, %v956_v34 }
 0x28d   : > { %v967_v14 = vadd.f32 %v961_v5, %v946_v7 }
 0x28f   : > { %v988_v10 = vadd.f32 %v982_v16, %v967_v14 }
 0x291   : > { %v981_v44 = vpop.permute.xlu2 %980 }
 0x293   : > { %v895_v35 = vpop.permute.xlu1 %894  ;;  %v996_v36 = vpop.permute.xlu0 %995 }
 0x294   : > { %v899_v47 = vsel %vm503_vm3, %v893_v27, %v895_v35  ;;  %v900_v49 = vsel %vm503_vm3, %v895_v35, %v897_v2 }
 0x295   : > { %v905_v52 = vadd.f32 %v899_v47, %v884_v48  ;;  %v906_v53 = vadd.f32 %v900_v49, %v885_v50 }
 0x297   : > { %v926_v57 = vadd.f32 %v920_v54, %v905_v52  ;;  %v927_v62 = vadd.f32 %v921_v60, %v906_v53 }
 0x299   : > { %v1021_v59 = vpop.permute.xlu2 %1020 }
 0x29b   : > { %v939_v51 = vpop.permute.xlu1 %938  ;;  %v937_v38 = vpop.permute.xlu0 %936 }
 0x29c   : > { %v941_v55 = vsel %vm551_vm4, %v935_v31, %v937_v38  ;;  %v942_v61 = vsel %vm551_vm4, %v937_v38, %v939_v51 }
 0x29d   : > { %v947_v63 = vadd.f32 %v941_v55, %v926_v57  ;;  %v948_v3 = vadd.f32 %v942_v61, %v927_v62 }
 0x2a1   : > { %v1023_v12 = vpop.permute.xlu2 %1022 }
 0x2a2   : > { %v1026_v27 = vsel %vm647_vm7, %v1021_v59, %v1023_v12 }
 0x2a3   : > { %v960_v39 = vpop.permute.xlu1 %959  ;;  %v958_v15 = vpop.permute.xlu0 %957 }
 0x2a4   : > { %v962_v40 = vsel %vm575_vm5, %v956_v34, %v958_v15  ;;  %v963_v0 = vsel %vm575_vm5, %v958_v15, %v960_v39 }
 0x2a5   : > { %v968_v4 = vadd.f32 %v962_v40, %v947_v63  ;;  %v969_v8 = vadd.f32 %v963_v0, %v948_v3 }
 0x2ab   : > { %v1000_v42 = vpop.permute.xlu1 %999  ;;  %v998_v43 = vpop.permute.xlu0 %997 }
 0x2ac   : > { %v1004_v20 = vsel %vm623_vm8, %v998_v43, %v1000_v42  ;;  %v1003_v25 = vsel %vm623_vm8, %v996_v36, %v998_v43 }
 0x2ad   : > { %v1009_v28 = vadd.f32 %v1003_v25, %v988_v10 }
 0x2b3   : > { %v979_v56 = vpop.permute.xlu0 %978  ;;  %v1019_v58 = vpop.permute.xlu1 %1018 }
 0x2b4   : > { %v983_v1 = vsel %vm599_vm6, %v977_v41, %v979_v56  ;;  %v984_v6 = vsel %vm599_vm6, %v979_v56, %v981_v44  ;;  %v1025_v26 = vsel %vm647_vm7, %v1019_v58, %v1021_v59 }
 0x2b5   : > { %v989_v9 = vadd.f32 %v983_v1, %v968_v4  ;;  %v990_v17 = vadd.f32 %v984_v6, %v969_v8 }
 0x2b7   : > { %v1010_v23 = vadd.f32 %v1004_v20, %v989_v9 }
 0x2b9   : > { %v1031_v29 = vadd.f32 %v1025_v26, %v1010_v23 }
 0x2bb   : > { %v1002_v11 = vpop.permute.xlu0 %1001  ;;  %v1017_v2 = vpop.permute.xlu1 %1016 }
 0x2bc   : > { %v1005_v21 = vsel %vm623_vm8, %v1000_v42, %v1002_v11  ;;  %v1024_v22 = vsel %vm647_vm7, %v1017_v2, %v1019_v58 }
 0x2bd   : > { %v1011_v24 = vadd.f32 %v1005_v21, %v990_v17  ;;  %v1030_v32 = vadd.f32 %v1024_v22, %v1009_v28 }
 0x2bf   : > { %v1032_v30 = vadd.f32 %v1026_v27, %v1011_v24 }
 0x2c3   : > { %v1037_v31 = vpop.permute.xlu0 %1036 }
 0x2c4   : > { %v1040_v19 = vadd.f32 %v1037_v31, %v1031_v29  ;;  %v1041_v33 = vadd.f32 %v1037_v31, %v1032_v30  ;;  %v1039_v13 = vadd.f32 %v1037_v31, %v1030_v32 }
 0x2c6   : > { %v1044_v34 = vrot.slane %v1040_v19, 4  ;;  %1048 = vst [vmem:[%s244_s11 + $0x8] sm:$0xf] %v1041_v33 }
 0x2c8   : > { %v1045_v35 = vsel %vm720_vm9, %v1039_v13, %v1044_v34 }
 0x2c9   : > { %1047 = vst [vmem:[%s244_s11] sm:$0xff] %v1045_v35 }
 0x2ca   : > { %1273 = shalt.err (!%p1270_p3)
}
 0x2cb   : > { %1197 = dma.vmem_to_hbm [thread:$0]  (%p1392_p5), %s1064_s17, 192, %s1066_s18, %s1050_s12  }
 0x2cc PF: > { %p1203_p4 = scmp.ge.s32.totalorder %s1308_s24, 2  ;;  %s1077_s26 = sand.u32 1, %s1296_s21  }
 0x2cd   : > { %s1078_s29 = scalar_lea.sflag [#allocation3], %s1077_s26 }
 0x2ce   : > { %p1200_p7 = pnand %p1203_p4, %p1396_p6 }
 0x2d0   : > { %p1201_p8 = pneg %p1200_p7 }
 0x2d2   : > { %1291 = dma.done.wait (%p1201_p8), %s1078_s29, 192  }
 0x2d3   : > { %1293 = vsyncadd (%p1201_p8), %s1078_s29, 4294967104  ;;  %p16_p9 = scmp.ge.s32.totalorder %s1379_s27, 4   ;;  %s1717_s21 = smov %s1300_s22 }
 0x2d4   : > { %s1718_s22 = smov %s1304_s23  ;;  %s1719_s23 = smov %s1390_s30 }
 0x2d5   : > { %s1720_s24 = smov %s1379_s27  ;;  %18 = sbr.rel (!%p16_p9) target bundleno = 3 (0x3), region = 79 }
 0x2da   :  { %1084 = vsyncpa [#allocation3], 1 }
 0x2db   :  { %1086 = vsyncpa [#allocation3 + $0x1], 1 }

</bundles_post_ra>
